<compile_context>
chip_gen: v6e
topology: v6e:2x2x1
jax: 0.10.0
libtpu: 0.0.40
codegen_flags: <defaults>
</compile_context>

<pallas_src>
import functools

import jax
import jax.numpy as jnp
from jax import lax
from jax.experimental import pallas as pl
from jax.experimental.pallas import tpu as pltpu


def _round_up(x, m):
    return ((x + m - 1) // m) * m


def _value_head_kernel(x_ref, w_ref, b_ref, o_ref):
    # x_ref : [TILE_B, H]  (VMEM, streamed per grid step; last block may be ragged)
    # w_ref : [1, H]       (VMEM, resident across the grid)
    # b_ref : [1]          (SMEM scalar)
    # o_ref : [1, TILE_B]  (VMEM, lane-dense output block)
    x = x_ref[...]
    w = w_ref[...]
    b = b_ref[0]
    # out[0, j] = sum_h w[0, h] * x[j, h]   (contract H of both -> MXU matmul).
    # Any relayout Mosaic inserts for the x tile is hidden under the feature
    # DMA for this purely HBM-bandwidth-bound op.
    acc = lax.dot_general(
        w, x,
        dimension_numbers=(((1,), (1,)), ((), ())),
        preferred_element_type=jnp.float32,
    )  # [1, TILE_B], f32
    o_ref[...] = (acc + b).astype(o_ref.dtype)


def _pick_tile_b(B, H, itemsize, target_bytes=2 << 20):
    """Size the batch tile by bytes (~2 MiB), keep >=2 grid steps when possible."""
    b_ceil = _round_up(B, 128)
    row_bytes = H * itemsize
    if b_ceil * row_bytes <= target_bytes:
        # Whole input fits in one ~2 MiB block: single grid step, no tiling.
        return b_ceil
    tile_b = _round_up(max(target_bytes // row_bytes, 1), 128)
    # Ensure at least 2 grid steps so both v7x TensorCores get work and the
    # DMA pipeline can overlap compute with the next block's fetch.
    tile_b = min(tile_b, _round_up(pl.cdiv(B, 2), 128))
    return max(tile_b, 128)


@functools.partial(jax.jit, static_argnames=("tile_b",))
def pvn_stage2_value_head(features, weight, bias, *, tile_b=None):
    """features: [B, H] f32, weight: [1, H] f32 (nn.Linear layout), bias: [1] f32 -> [B, 1]."""
    B, H = features.shape
    assert weight.shape == (1, H)
    assert bias.shape == (1,)

    itemsize = jnp.dtype(features.dtype).itemsize
    if tile_b is None:
        tile_b = _pick_tile_b(B, H, itemsize)
    else:
        tile_b = max(128, _round_up(int(tile_b), 128))

    grid = (pl.cdiv(B, tile_b),)  # ragged last block handled by Pallas

    # Explicit scoped-VMEM budget: double-buffered feature tiles + resident
    # weight tile + double-buffered output blocks + slack.
    vmem_needed = (
        2 * tile_b * H * itemsize                    # feature tiles (x2 buffers)
        + 2 * 8 * _round_up(H, 128) * itemsize       # weight tile (sublane-padded)
        + 2 * 8 * tile_b * itemsize                  # output blocks (sublane-padded)
    )
    vmem_limit = int(min(max(vmem_needed + (2 << 20), 8 << 20), 32 << 20))

    out_row = pl.pallas_call(
        _value_head_kernel,
        out_shape=jax.ShapeDtypeStruct((1, B), features.dtype),
        grid_spec=pltpu.PrefetchScalarGridSpec(
            num_scalar_prefetch=0,
            grid=grid,
            in_specs=[
                # Streamed batch tile of the features (partial DMA on last block).
                pl.BlockSpec((tile_b, H), lambda i: (i, 0)),
                # Weight: same block every step -> stays resident in VMEM.
                pl.BlockSpec((1, H), lambda i: (0, 0)),
                # Bias: single scalar in SMEM, no VMEM tile / DMA pair.
                pl.BlockSpec(memory_space=pltpu.MemorySpace.SMEM),
            ],
            # Lane-dense output: one [1, tile_b] block per grid step; the
            # out-of-range lanes of the last block are masked off.
            out_specs=pl.BlockSpec((1, tile_b), lambda i: (0, i)),
        ),
        compiler_params=pltpu.CompilerParams(
            dimension_semantics=("parallel",),
            vmem_limit_bytes=vmem_limit,
        ),
        cost_estimate=pl.CostEstimate(
            flops=2 * B * H,
            transcendentals=0,
            bytes_accessed=B * H * itemsize + H * itemsize + itemsize + B * itemsize,
        ),
    )(features, weight, bias)

    # [1, B] -> [B, 1]: tiny relayout (B*4 bytes), kept to match nn.Linear output.
    return out_row.reshape(B, 1)


def init_params(key, h2=128):
    """Deterministic init matching nn.Linear(h2, 1) default (uniform +-1/sqrt(h2))."""
    kw, kb = jax.random.split(key)
    bound = 1.0 / jnp.sqrt(jnp.float32(h2))
    weight = jax.random.uniform(kw, (1, h2), jnp.float32, -bound, bound)
    bias = jax.random.uniform(kb, (1,), jnp.float32, -bound, bound)
    return weight, bias


if __name__ == "__main__":
    key = jax.random.PRNGKey(0)
    k_feat, k_par = jax.random.split(key)

    # Module default h2=128; B=300 is not a multiple of 128, so it exercises
    # the ragged last block (no host-side padding anywhere).
    B, H2 = 300, 128
    features = jax.random.normal(k_feat, (B, H2), jnp.float32)
    weight, bias = init_params(k_par, H2)
    ref = features @ weight.T + bias

    # 1) Default path: tiny input -> single untiled block, grid=(1,).
    out = jax.block_until_ready(pvn_stage2_value_head(features, weight, bias))
    assert out.shape == (B, 1)
    assert jnp.allclose(out, ref, atol=1e-5, rtol=1e-5)

    # 2) Forced multi-step ragged path: tile_b=128 -> grid=(3,), last block partial.
    out2 = jax.block_until_ready(
        pvn_stage2_value_head(features, weight, bias, tile_b=128)
    )
    assert out2.shape == (B, 1)
    assert jnp.allclose(out2, ref, atol=1e-5, rtol=1e-5)

    print("KERNEL_OK")
</pallas_src>

<mosaic_0001>
module attributes {stable_mosaic.version = 11 : i64} {
  func.func @_value_head_kernel(%arg0: i32, %arg1: memref<384x128xf32, #tpu.memory_space<vmem>>, %arg2: memref<1x128xf32, #tpu.memory_space<vmem>>, %arg3: memref<1xf32, #tpu.memory_space<smem>>, %arg4: memref<1x384xf32, #tpu.memory_space<vmem>>) attributes {dimension_semantics = [#tpu.dimension_semantics<parallel>], iteration_bounds = array<i64: 1>, scalar_prefetch = 0 : i64, scratch_operands = 0 : i64, tpu.core_type = #tpu.core_type<tc>, window_params = [{transform_indices = @transform_0, window_bounds = array<i64: 384, 128>}, {pipeline_mode = #tpu.pipeline_mode<synchronous>, transform_indices = @transform_1, window_bounds = array<i64: 1, 128>}, {transform_indices = @transform_2, window_bounds = array<i64: 1>}, {transform_indices = @transform_3, window_bounds = array<i64: 1, 384>}]} {
    %c0 = arith.constant 0 : index
    %c0_0 = arith.constant 0 : index
    %0 = vector.load %arg1[%c0, %c0_0] : memref<384x128xf32, #tpu.memory_space<vmem>>, vector<384x128xf32>
    %c0_1 = arith.constant 0 : index
    %c0_2 = arith.constant 0 : index
    %1 = vector.load %arg2[%c0_1, %c0_2] : memref<1x128xf32, #tpu.memory_space<vmem>>, vector<1x128xf32>
    %c0_3 = arith.constant 0 : index
    %2 = memref.load %arg3[%c0_3] : memref<1xf32, #tpu.memory_space<smem>>
    %cst = arith.constant dense<0.000000e+00> : vector<1x384xf32>
    %3 = tpu.matmul %1, %0, %cst {dimension_numbers = #tpu.dot_dimension_numbers<[1], [1], [0], [0], [0, 0, 1, 0], [], []>} : vector<1x128xf32>, vector<384x128xf32>, vector<1x384xf32> -> vector<1x384xf32>
    %4 = vector.broadcast %2 : f32 to vector<1x384xf32>
    %5 = arith.addf %3, %4 : vector<1x384xf32>
    %c0_4 = arith.constant 0 : index
    %c0_5 = arith.constant 0 : index
    %6 = vector.load %arg4[%c0_4, %c0_5] : memref<1x384xf32, #tpu.memory_space<vmem>>, vector<1x384xf32>
    tpu.vector_store %arg4[%c0_4, %c0_5], %5 {strides = array<i32>} : memref<1x384xf32, #tpu.memory_space<vmem>>, vector<1x384xf32>,
    return
  }
  func.func @transform_0(%arg0: i32) -> (i32, i32) {
    %c0_i32 = arith.constant 0 : i32
    %c0_i32_0 = arith.constant 0 : i32
    return %arg0, %c0_i32 : i32, i32
  }
  func.func @transform_1(%arg0: i32) -> (i32, i32) {
    %c0_i32 = arith.constant 0 : i32
    %c0_i32_0 = arith.constant 0 : i32
    %c0_i32_1 = arith.constant 0 : i32
    return %c0_i32, %c0_i32_0 : i32, i32
  }
  func.func @transform_2(%arg0: i32) -> i32 {
    %c0_i32 = arith.constant 0 : i32
    %c0_i32_0 = arith.constant 0 : i32
    return %c0_i32 : i32
  }
  func.func @transform_3(%arg0: i32) -> (i32, i32) {
    %c0_i32 = arith.constant 0 : i32
    %c0_i32_0 = arith.constant 0 : i32
    return %c0_i32, %arg0 : i32, i32
  }
}

</mosaic_0001>

<bundles_post_ra>
// kernel: pvn_stage2_value_head.1
= control target key start
LH: loop header
LB: loop body
LE: loop exit
PB: predicated region body
PF: predicated region fallthrough
CT: control target
= control target key end

     0   :  { %9 = vsyncpa [#allocation4], 0  ;;  %s467_s0 = inlined_call_operand.hbm [shape: f32[300,128], index: 0, kind: input, shape index: {}]   ;;  %s468_s1 = inlined_call_operand.vmem [shape: f32[1,128], index: 1, kind: input, shape index: {}]   ;;  %s469_s2 = inlined_call_operand.<no memory space> [shape: f32[1], index: 2, kind: input, shape index: {}]   ;;  %s470_s3 = inlined_call_operand.hbm [shape: f32[1,300], index: 3, kind: output, shape index: {}]  }
   0x1   :  { %10 = vsyncpa [#allocation5], 0 }
   0x2   :  { %15 = vsyncadd [#allocation4], 1280  ;;  %s406_s12 = smov [#allocation3]  }
   0x3   :  { %s16_s13 = sshll.u32 %s406_s12, 4  ;;  %s17_s13 = int_to_ptr.vmem [resolvable:$true] %s16_s13 }
   0x4   :  { %s370_s14 = scalar_lea.vmem %s17_s13, 4864  ;;  %s374_s15 = scalar_lea.vmem %s17_s13, 6144 }
   0x5   :  { %p371_p0 = scmp.ne.s32.totalorder %s17_s13, %s370_s14  ;;  %p375_p1 = scmp.lt.s32.totalorder %s17_s13, %s17_s13 }
   0x6   :  { %p376_p2 = scmp.lt.s32.totalorder %s374_s15, %s370_s14 }
   0x8   :  { %p377_p3 = por %p376_p2, %p375_p1 }
   0xa   :  { %p378_p4 = pnand %p377_p3, %p371_p0 }
   0xc   :  { %381 = shalt.err (!%p378_p4)
}
   0xd   :  { %s407_s16 = smov 128   ;;  %s408_s17 = smov 8  }
   0xe   :  { %22 = dma.hbm_to_vmem [thread:$0]  %s467_s0, 4864, %s17_s13, [#allocation4], %s407_s16, %s407_s16, %s408_s17  }
   0xf   :  { %402 = dma.done.wait [#allocation4], 6144  }
  0x10   :  { %403 = vsyncadd [#allocation4], 4294961152  ;;  %v409_v0 = vmov 0.0   ;;  %vm410_vm0 = vmmov 0   ;;  %v61_v1 = vld [vmem:[#allocation3 + $0xf8] sm:$0xff]  ;;  %v60_v4 = vld [vmem:[#allocation3 + $0xf0] sm:$0xff]  ;;  %v229_v52 = vlaneseq  ;;  %v80_v56 = vstv %s469_s2 }
  0x11   :  { %320 = vmatprep.subr.mxu1 %v409_v0  ;;  %352 = vmatprep.mubr.msk.f32.mxu1 %vm410_vm0, %v409_v0  ;;  %v45_v2 = vld [vmem:[#allocation3 + $0x78] sm:$0xff]  ;;  %v76_v5 = vld [vmem:[#allocation3 + $0x170] sm:$0xff]  ;;  %v59_v7 = vld [vmem:[#allocation3 + $0xe8] sm:$0xff]  ;;  %v411_v50 = vmov 1966171168   ;;  %s412_s22 = smov [#allocation6]  }
  0x12   :  { %v77_v3 = vld [vmem:[#allocation3 + $0x178] sm:$0xff]  ;;  %269 = vmatprep.subr.mxu0 %v61_v1  ;;  %v44_v6 = vld [vmem:[#allocation3 + $0x70] sm:$0xff]  ;;  %v75_v8 = vld [vmem:[#allocation3 + $0x168] sm:$0xff]  ;;  %v227_v51 = vunpack.c.l.s4 %v411_v50  ;;  %v230_v54 = vshrl.u32 %v229_v52, 7  ;;  %s260_s23 = sshll.u32 %s412_s22, 4  ;;  %vm251_vm1 = vcmp.lt.s32.totalorder %v229_v52, 384  ;;  %s261_s23 = int_to_ptr.vmem [resolvable:$true] %s260_s23 }
  0x13   :  { %321 = vmatpush3.xpose.msra.mxu1 %v77_v3  ;;  %270 = vmatpush3.xpose.msra.mxu0 %v45_v2  ;;  %v43_v9 = vld [vmem:[#allocation3 + $0x68] sm:$0xff]  ;;  %v58_v10 = vld [vmem:[#allocation3 + $0xe0] sm:$0xff]  ;;  %v57_v13 = vld [vmem:[#allocation3 + $0xd8] sm:$0xff]  ;;  %s382_s24 = scalar_lea.vmem %s261_s23, 48  ;;  %s386_s2 = scalar_lea.vmem %s261_s23, 64 }
  0x14   :  { %322 = vmatprep.subr.mxu1 %v409_v0  ;;  %271 = vmatprep.subr.mxu0 %v60_v4  ;;  %v74_v11 = vld [vmem:[#allocation3 + $0x160] sm:$0xff]  ;;  %v73_v14 = vld [vmem:[#allocation3 + $0x158] sm:$0xff]  ;;  %v56_v17 = vld [vmem:[#allocation3 + $0xd0] sm:$0xff]  ;;  %v228_v53 = vunpack.c.0.s8 %v227_v51  ;;  %p383_p5 = scmp.ne.s32.totalorder %s261_s23, %s382_s24  ;;  %p387_p6 = scmp.lt.s32.totalorder %s261_s23, %s261_s23 }
  0x15   :  { %v42_v12 = vld [vmem:[#allocation3 + $0x60] sm:$0xff]  ;;  %v41_v15 = vld [vmem:[#allocation3 + $0x58] sm:$0xff]  ;;  %v72_v18 = vld [vmem:[#allocation3 + $0x150] sm:$0xff]  ;;  %p388_p7 = scmp.lt.s32.totalorder %s386_s2, %s382_s24 }
  0x16   :  { %v445_v16 = vld [vmem:[%s468_s1] sm:$0x1]  ;;  %v40_v19 = vld [vmem:[#allocation3 + $0x50] sm:$0xff]  ;;  %v55_v20 = vld [vmem:[#allocation3 + $0xc8] sm:$0xff]  ;;  %v231_v58 = vsub.s32 %v228_v53, %v230_v54 }
  0x17   :  { %323 = vmatpush3.xpose.msra.mxu1 %v76_v5  ;;  %272 = vmatpush3.xpose.msra.mxu0 %v44_v6  ;;  %v71_v21 = vld [vmem:[#allocation3 + $0x148] sm:$0xff]  ;;  %v54_v23 = vld [vmem:[#allocation3 + $0xc0] sm:$0xff]  ;;  %v53_v26 = vld [vmem:[#allocation3 + $0xb8] sm:$0xff]  ;;  %p389_p8 = por %p388_p7, %p387_p6 }
  0x18   :  { %324 = vmatprep.subr.mxu1 %v409_v0  ;;  %273 = vmatprep.subr.mxu0 %v59_v7  ;;  %v39_v22 = vld [vmem:[#allocation3 + $0x48] sm:$0xff]  ;;  %v70_v24 = vld [vmem:[#allocation3 + $0x140] sm:$0xff]  ;;  %v69_v27 = vld [vmem:[#allocation3 + $0x138] sm:$0xff] }
  0x19   :  { %301 = vmatprep.mubr.f32.mxu0 %v445_v16  ;;  %v38_v25 = vld [vmem:[#allocation3 + $0x40] sm:$0xff]  ;;  %v37_v28 = vld [vmem:[#allocation3 + $0x38] sm:$0xff]  ;;  %v52_v29 = vld [vmem:[#allocation3 + $0xb0] sm:$0xff]  ;;  %p390_p9 = pnand %p389_p8, %p383_p5 }
  0x1a   :  { %v68_v30 = vld [vmem:[#allocation3 + $0x130] sm:$0xff]  ;;  %v51_v32 = vld [vmem:[#allocation3 + $0xa8] sm:$0xff]  ;;  %v50_v35 = vld [vmem:[#allocation3 + $0xa0] sm:$0xff] }
  0x1b   :  { %325 = vmatpush3.xpose.msra.mxu1 %v75_v8  ;;  %274 = vmatpush3.xpose.msra.mxu0 %v43_v9  ;;  %v36_v31 = vld [vmem:[#allocation3 + $0x30] sm:$0xff]  ;;  %v67_v33 = vld [vmem:[#allocation3 + $0x128] sm:$0xff]  ;;  %v66_v36 = vld [vmem:[#allocation3 + $0x120] sm:$0xff] }
  0x1c   :  { %326 = vmatprep.subr.mxu1 %v409_v0  ;;  %275 = vmatprep.subr.mxu0 %v58_v10  ;;  %v35_v34 = vld [vmem:[#allocation3 + $0x28] sm:$0xff]  ;;  %v34_v37 = vld [vmem:[#allocation3 + $0x20] sm:$0xff]  ;;  %v49_v38 = vld [vmem:[#allocation3 + $0x98] sm:$0xff] }
  0x1d   :  { %v65_v39 = vld [vmem:[#allocation3 + $0x118] sm:$0xff]  ;;  %v48_v41 = vld [vmem:[#allocation3 + $0x90] sm:$0xff]  ;;  %v47_v44 = vld [vmem:[#allocation3 + $0x88] sm:$0xff] }
  0x1e   :  { %v33_v40 = vld [vmem:[#allocation3 + $0x18] sm:$0xff]  ;;  %v64_v42 = vld [vmem:[#allocation3 + $0x110] sm:$0xff]  ;;  %v63_v45 = vld [vmem:[#allocation3 + $0x108] sm:$0xff] }
  0x1f   :  { %327 = vmatpush3.xpose.msra.mxu1 %v74_v11  ;;  %276 = vmatpush3.xpose.msra.mxu0 %v42_v12  ;;  %v32_v43 = vld [vmem:[#allocation3 + $0x10] sm:$0xff]  ;;  %v31_v46 = vld [vmem:[#allocation3 + $0x8] sm:$0xff]  ;;  %v46_v47 = vld [vmem:[#allocation3 + $0x80] sm:$0xff] }
  0x20   :  { %328 = vmatprep.subr.mxu1 %v409_v0  ;;  %277 = vmatprep.subr.mxu0 %v57_v13  ;;  %v62_v48 = vld [vmem:[#allocation3 + $0x100] sm:$0xff] }
  0x21   :  { %v30_v49 = vld [vmem:[#allocation3] sm:$0xff] }
  0x23   :  { %329 = vmatpush3.xpose.msra.mxu1 %v73_v14  ;;  %278 = vmatpush3.xpose.msra.mxu0 %v41_v15 }
  0x24   :  { %330 = vmatprep.subr.mxu1 %v409_v0  ;;  %279 = vmatprep.subr.mxu0 %v56_v17 }
  0x27   :  { %331 = vmatpush3.xpose.msra.mxu1 %v72_v18  ;;  %280 = vmatpush3.xpose.msra.mxu0 %v40_v19 }
  0x28   :  { %332 = vmatprep.subr.mxu1 %v409_v0  ;;  %281 = vmatprep.subr.mxu0 %v55_v20 }
  0x2b   :  { %333 = vmatpush3.xpose.msra.mxu1 %v71_v21  ;;  %282 = vmatpush3.xpose.msra.mxu0 %v39_v22 }
  0x2c   :  { %334 = vmatprep.subr.mxu1 %v409_v0  ;;  %283 = vmatprep.subr.mxu0 %v54_v23 }
  0x2f   :  { %335 = vmatpush3.xpose.msra.mxu1 %v70_v24  ;;  %284 = vmatpush3.xpose.msra.mxu0 %v38_v25 }
  0x30   :  { %336 = vmatprep.subr.mxu1 %v409_v0  ;;  %285 = vmatprep.subr.mxu0 %v53_v26 }
  0x33   :  { %337 = vmatpush3.xpose.msra.mxu1 %v69_v27  ;;  %286 = vmatpush3.xpose.msra.mxu0 %v37_v28 }
  0x34   :  { %338 = vmatprep.subr.mxu1 %v409_v0  ;;  %287 = vmatprep.subr.mxu0 %v52_v29 }
  0x37   :  { %339 = vmatpush3.xpose.msra.mxu1 %v68_v30  ;;  %288 = vmatpush3.xpose.msra.mxu0 %v36_v31 }
  0x38   :  { %340 = vmatprep.subr.mxu1 %v409_v0  ;;  %289 = vmatprep.subr.mxu0 %v51_v32 }
  0x3b   :  { %341 = vmatpush3.xpose.msra.mxu1 %v67_v33  ;;  %290 = vmatpush3.xpose.msra.mxu0 %v35_v34 }
  0x3c   :  { %342 = vmatprep.subr.mxu1 %v409_v0  ;;  %291 = vmatprep.subr.mxu0 %v50_v35 }
  0x3f   :  { %343 = vmatpush3.xpose.msra.mxu1 %v66_v36  ;;  %292 = vmatpush3.xpose.msra.mxu0 %v34_v37 }
  0x40   :  { %344 = vmatprep.subr.mxu1 %v409_v0  ;;  %293 = vmatprep.subr.mxu0 %v49_v38 }
  0x43   :  { %345 = vmatpush3.xpose.msra.mxu1 %v65_v39  ;;  %294 = vmatpush3.xpose.msra.mxu0 %v33_v40 }
  0x44   :  { %346 = vmatprep.subr.mxu1 %v409_v0  ;;  %295 = vmatprep.subr.mxu0 %v48_v41 }
  0x47   :  { %347 = vmatpush3.xpose.msra.mxu1 %v64_v42  ;;  %296 = vmatpush3.xpose.msra.mxu0 %v32_v43 }
  0x48   :  { %348 = vmatprep.subr.mxu1 %v409_v0  ;;  %297 = vmatprep.subr.mxu0 %v47_v44 }
  0x4b   :  { %349 = vmatpush3.xpose.msra.mxu1 %v63_v45  ;;  %298 = vmatpush3.xpose.msra.mxu0 %v31_v46 }
  0x4c   :  { %350 = vmatprep.subr.mxu1 %v409_v0  ;;  %299 = vmatprep.subr.mxu0 %v46_v47 }
  0x4f   :  { %351 = vmatpush3.xpose.msra.mxu1 %v62_v48  ;;  %300 = vmatpush3.xpose.msra.mxu0 %v30_v49 }
  0x52   :  { %353 = vmatmul.mubr.f32.vlgmr.msra.gmra.mxu1 %v445_v16  ;;  %302 = vmatmul.mubr.f32.vlgmr.msra.gmra.mxu0 %v445_v16 }
 0x112   :  { %v218_v55 = vpop.f32.mrf.mxu1  ;;  %v147_v57 = vpop.f32.mrf.mxu0 }
 0x113   :  { %v219_v59 = vadd.f32 %v218_v55, %v80_v56  ;;  %v148_v62 = vadd.f32 %v147_v57, %v80_v56 }
 0x114   :  { %v354_v60 = vpop.f32.mrf.mxu1  ;;  %v149_v61 = vpop.f32.mrf.mxu0 }
 0x115   :  { %v150_v63 = vadd.f32 %v149_v61, %v80_v56  ;;  %v239_v1 = vrot.slane %v219_v59, %v231_v58 }
 0x117   :  { %v225_v0 = vcombine.low %v148_v62, %v150_v63 }
 0x119   :  { %v232_v2 = vrot.slane %v225_v0, %v231_v58 }
 0x11b   :  { %v240_v3 = vcombine.low %v232_v2, %v239_v1 }
 0x11d   :  { %v247_v4 = vrot.slane %v240_v3, %v231_v58 }
 0x11f   :  { %253 = vst.msk [vmem:[#allocation6] sm:$0x7] %vm251_vm1, %v247_v4 }
 0x120   :  { %393 = shalt.err (!%p390_p9)
}
 0x121   :  { %263 = dma.vmem_to_hbm [thread:$0]  %s261_s23, 48, %s470_s3, [#allocation5]  }
 0x122   :  { %404 = dma.done.wait [#allocation5], 48  }
 0x123   :  { %405 = vsyncadd [#allocation5], 4294967248 }
 0x124   :  { %267 = vsyncpa [#allocation4], 1 }
 0x125   :  { %268 = vsyncpa [#allocation5], 1 }

</bundles_post_ra>
